<compile_context>
chip_gen: v6e
topology: v6e:2x2x1
jax: 0.10.0
libtpu: 0.0.40
codegen_flags: <defaults>
</compile_context>

<pallas_src>
import functools

import numpy as np
import jax
import jax.numpy as jnp
from jax.experimental import pallas as pl
from jax.experimental.pallas import tpu as pltpu

LANES = 128             # vreg lane width; batch is laid out along lanes
_MAX_BLOCK_ROWS = 1024  # 1024 x 128 f32 = 512 KiB per block
_UNROLL_LIMIT = 32      # fully unroll hidden loops up to this many units per group


def _hidden_loop(step, count, acc):
    """Fully unroll small hidden loops; bound vreg pressure with fori_loop otherwise."""
    if count <= _UNROLL_LIMIT:
        for h in range(count):
            acc = step(h, acc)
        return acc
    return jax.lax.fori_loop(0, count, step, acc, unroll=8)


def mlp_kernel_folded(p_ref, x_ref, o_ref, *, n_pos, n_neg):
    """w3 folded into layer 2 (sign pattern of w3 known statically).

    p_ref (SMEM f32): [w1, b1, b3,
                       (w2*w3)[w3>=0], (b2*w3)[w3>=0],
                       (w2*w3)[w3<0],  (b2*w3)[w3<0]]
    out = b3 + sum_pos max(w'*h1 + b', 0) + sum_neg min(w'*h1 + b', 0)
    """
    w1 = p_ref[0]
    b1 = p_ref[1]
    b3 = p_ref[2]

    x = x_ref[...]
    h1 = jnp.maximum(x * w1 + b1, 0.0)   # layer 1: scalar FMA + relu on the VPU
    acc = jnp.zeros_like(h1) + b3        # init accumulator with the final bias

    pos_w = 3
    pos_b = 3 + n_pos
    neg_w = 3 + 2 * n_pos
    neg_b = 3 + 2 * n_pos + n_neg

    def pos_step(h, a):
        return a + jnp.maximum(h1 * p_ref[pos_w + h] + p_ref[pos_b + h], 0.0)

    def neg_step(h, a):
        return a + jnp.minimum(h1 * p_ref[neg_w + h] + p_ref[neg_b + h], 0.0)

    acc = _hidden_loop(pos_step, n_pos, acc)
    acc = _hidden_loop(neg_step, n_neg, acc)

    o_ref[...] = acc.astype(o_ref.dtype)


def mlp_kernel_generic(p_ref, x_ref, o_ref, *, hidden):
    """Fallback when w3's signs are not statically known (e.g. traced params).

    p_ref (SMEM f32): [w1, b1, b3, w2[0:H], b2[0:H], w3[0:H]]
    """
    w1 = p_ref[0]
    b1 = p_ref[1]
    b3 = p_ref[2]

    x = x_ref[...]
    h1 = jnp.maximum(x * w1 + b1, 0.0)
    acc = jnp.zeros_like(h1) + b3

    def step(h, a):
        r = jnp.maximum(h1 * p_ref[3 + h] + p_ref[3 + hidden + h], 0.0)
        return a + r * p_ref[3 + 2 * hidden + h]

    acc = _hidden_loop(step, hidden, acc)
    o_ref[...] = acc.astype(o_ref.dtype)


def net_forward(x, params, *, block_rows=None, out_dtype=jnp.float32):
    """x: (N, 1) float32. params: dict of (in, out) weights / (1, out) biases."""
    n = x.shape[0]
    hidden = params["w2"].shape[1]

    # ---- Fold / flatten parameters into one small SMEM-resident vector. ----
    w2 = params["w2"].reshape(-1).astype(jnp.float32)
    b2 = params["b2"].reshape(-1).astype(jnp.float32)
    w3 = params["w3"].reshape(-1).astype(jnp.float32)
    head = jnp.concatenate([
        params["w1"].reshape(-1), params["b1"].reshape(-1), params["b3"].reshape(-1)
    ]).astype(jnp.float32)

    try:  # fold w3 into layer 2 when its sign pattern is statically known
        w3_nonneg = np.asarray(jax.device_get(w3)) >= 0.0
    except Exception:  # params are tracers (e.g. jitted) -> use the unfolded kernel
        w3_nonneg = None

    if w3_nonneg is not None:
        pos = np.nonzero(w3_nonneg)[0]
        neg = np.nonzero(~w3_nonneg)[0]
        wf = w2 * w3
        bf = b2 * w3
        pvec = jnp.concatenate([head, wf[pos], bf[pos], wf[neg], bf[neg]])
        kernel = functools.partial(
            mlp_kernel_folded, n_pos=int(pos.size), n_neg=int(neg.size))
    else:
        pvec = jnp.concatenate([head, w2, b2, w3])
        kernel = functools.partial(mlp_kernel_generic, hidden=int(hidden))

    # ---- Lane-dense layout: batch flattened to (rows, 128). ----
    x_flat = x.reshape(-1).astype(jnp.float32)
    n_pad = pl.cdiv(n, LANES) * LANES
    if n_pad != n:
        # Minimal pad: to one 128-lane row only (at most 127 elements), never to a
        # whole block -- partial blocks are handled by grid = cdiv(rows, block_rows).
        x_flat = jnp.pad(x_flat, (0, n_pad - n))
    rows = n_pad // LANES
    x2d = x_flat.reshape(rows, LANES)

    # Sublane granularity: 8 rows for 32-bit outputs, 16 for packed 16-bit outputs.
    gran = 8 if jnp.dtype(out_dtype).itemsize >= 4 else 16

    if block_rows is None:
        if rows <= gran:
            block_rows = rows  # one block equal to the (tiny) full array
        else:
            # Large blocks (amortize per-step overhead) but keep >=2 grid steps so
            # v7x's two TensorCores both get work; cap at 1024 rows (512 KiB f32).
            half = pl.cdiv(rows, 2)
            block_rows = min(_MAX_BLOCK_ROWS, max(gran, pl.cdiv(half, gran) * gran))
    assert block_rows == rows or block_rows % gran == 0, (
        f"block_rows must be a multiple of {gran} (or equal rows={rows})")

    num_blocks = pl.cdiv(rows, block_rows)

    def _x_spec():
        # Triple-buffer the streamed input when there are enough blocks: per-block
        # VALU time is short at small hidden, so extra pipeline depth hides DMA
        # issue latency. Falls back cleanly if pipeline_mode is unavailable.
        if num_blocks >= 2:
            try:
                return pl.BlockSpec((block_rows, LANES), lambda i: (i, 0),
                                    pipeline_mode=pl.Buffered(min(3, num_blocks)))
            except (TypeError, AttributeError):
                pass
        return pl.BlockSpec((block_rows, LANES), lambda i: (i, 0))

    out2d = pl.pallas_call(
        kernel,
        out_shape=jax.ShapeDtypeStruct((rows, LANES), out_dtype),
        grid=(num_blocks,),
        in_specs=[
            # Un-tiled SMEM parameter vector: constant block index => fetched once
            # before the steady-state loop (equivalent to scalar prefetch here).
            pl.BlockSpec(memory_space=pltpu.MemorySpace.SMEM),
            _x_spec(),
        ],
        out_specs=pl.BlockSpec((block_rows, LANES), lambda i: (i, 0)),
        compiler_params=pltpu.CompilerParams(
            dimension_semantics=("parallel",),  # batch axis: megacore-shardable
        ),
    )(pvec, x2d)

    return out2d.reshape(-1)[:n].reshape(n, 1)


def init_params(key, hidden):
    """Deterministic init mirroring nn.Linear shapes (stored as (in, out) / (1, out))."""
    k1, k2, k3, k4, k5, k6 = jax.random.split(key, 6)

    def u(k, shape, fan_in):  # PyTorch nn.Linear: U(-1/sqrt(fan_in), 1/sqrt(fan_in))
        bound = 1.0 / jnp.sqrt(jnp.float32(fan_in))
        return jax.random.uniform(k, shape, jnp.float32, -bound, bound)

    return {
        "w1": u(k1, (1, 1), 1),            # c1: Linear(1, 1)
        "b1": u(k2, (1, 1), 1),
        "w2": u(k3, (1, hidden), 1),       # c2: Linear(1, hidden)
        "b2": u(k4, (1, hidden), 1),
        "w3": u(k5, (hidden, 1), hidden),  # c3: Linear(hidden, 1)
        "b3": u(k6, (1, 1), hidden),
    }


def reference_forward(x, p):
    h1 = jnp.maximum(x @ p["w1"] + p["b1"], 0.0)
    h2 = jnp.maximum(h1 @ p["w2"] + p["b2"], 0.0)
    return h2 @ p["w3"] + p["b3"]


if __name__ == "__main__":
    key = jax.random.PRNGKey(0)
    kx, kp, kx2, kx3, kp3 = jax.random.split(key, 5)

    # --- Test 1: streamlit default hidden=5, tiny batch (single full-array block).
    hidden = 5
    n = 8
    x = jax.random.uniform(kx, (n, 1), jnp.float32)     # normalized 'dia' in [0,1]
    params = init_params(kp, hidden)
    out = net_forward(x, params)
    jax.block_until_ready(out)
    ref = reference_forward(x, params)
    assert out.shape == (n, 1)
    assert jnp.allclose(out, ref, atol=1e-5, rtol=1e-5)

    # --- Test 2: unaligned batch -> minimal lane pad, 2-step grid, partial last block.
    n2 = 3000
    x2 = jax.random.uniform(kx2, (n2, 1), jnp.float32)
    out2 = net_forward(x2, params)
    jax.block_until_ready(out2)
    ref2 = reference_forward(x2, params)
    assert out2.shape == (n2, 1)
    assert jnp.allclose(out2, ref2, atol=1e-5, rtol=1e-5)

    # --- Test 3: hidden=100 (UI max) -> fori_loop hidden path; bf16 output store.
    hidden3 = 100
    n3 = 4096
    params3 = init_params(kp3, hidden3)
    x3 = jax.random.uniform(kx3, (n3, 1), jnp.float32)
    out3 = net_forward(x3, params3, out_dtype=jnp.bfloat16)
    jax.block_until_ready(out3)
    ref3 = reference_forward(x3, params3)
    assert out3.shape == (n3, 1)
    assert jnp.allclose(out3.astype(jnp.float32), ref3, atol=2e-2, rtol=2e-2)

    print("KERNEL_OK")
</pallas_src>

<mosaic_0001>
module attributes {stable_mosaic.version = 11 : i64} {
  func.func @mlp_kernel_folded(%arg0: i32, %arg1: memref<13xf32, #tpu.memory_space<smem>>, %arg2: memref<1x128xf32, #tpu.memory_space<vmem>>, %arg3: memref<1x128xf32, #tpu.memory_space<vmem>>) attributes {dimension_semantics = [#tpu.dimension_semantics<parallel>], iteration_bounds = array<i64: 1>, scalar_prefetch = 0 : i64, scratch_operands = 0 : i64, tpu.core_type = #tpu.core_type<tc>, window_params = [{transform_indices = @transform_0, window_bounds = array<i64: 13>}, {transform_indices = @transform_1, window_bounds = array<i64: 1, 128>}, {transform_indices = @transform_2, window_bounds = array<i64: 1, 128>}]} {
    %c0 = arith.constant 0 : index
    %0 = memref.load %arg1[%c0] : memref<13xf32, #tpu.memory_space<smem>>
    %c1 = arith.constant 1 : index
    %1 = memref.load %arg1[%c1] : memref<13xf32, #tpu.memory_space<smem>>
    %c2 = arith.constant 2 : index
    %2 = memref.load %arg1[%c2] : memref<13xf32, #tpu.memory_space<smem>>
    %c0_0 = arith.constant 0 : index
    %c0_1 = arith.constant 0 : index
    %3 = vector.load %arg2[%c0_0, %c0_1] : memref<1x128xf32, #tpu.memory_space<vmem>>, vector<1x128xf32>
    %4 = vector.broadcast %0 : f32 to vector<1x128xf32>
    %5 = arith.mulf %3, %4 : vector<1x128xf32>
    %6 = vector.broadcast %1 : f32 to vector<1x128xf32>
    %7 = arith.addf %5, %6 : vector<1x128xf32>
    %cst = arith.constant 0.000000e+00 : f32
    %8 = vector.broadcast %cst : f32 to vector<1x128xf32>
    %9 = arith.maximumf %7, %8 : vector<1x128xf32>
    %cst_2 = arith.constant 0.000000e+00 : f32
    %10 = vector.broadcast %cst_2 : f32 to vector<1x128xf32>
    %11 = vector.broadcast %2 : f32 to vector<1x128xf32>
    %12 = arith.addf %10, %11 : vector<1x128xf32>
    %c3 = arith.constant 3 : index
    %13 = memref.load %arg1[%c3] : memref<13xf32, #tpu.memory_space<smem>>
    %14 = vector.broadcast %13 : f32 to vector<1x128xf32>
    %15 = arith.mulf %9, %14 : vector<1x128xf32>
    %c6 = arith.constant 6 : index
    %16 = memref.load %arg1[%c6] : memref<13xf32, #tpu.memory_space<smem>>
    %17 = vector.broadcast %16 : f32 to vector<1x128xf32>
    %18 = arith.addf %15, %17 : vector<1x128xf32>
    %cst_3 = arith.constant 0.000000e+00 : f32
    %19 = vector.broadcast %cst_3 : f32 to vector<1x128xf32>
    %20 = arith.maximumf %18, %19 : vector<1x128xf32>
    %21 = arith.addf %12, %20 : vector<1x128xf32>
    %c4 = arith.constant 4 : index
    %22 = memref.load %arg1[%c4] : memref<13xf32, #tpu.memory_space<smem>>
    %23 = vector.broadcast %22 : f32 to vector<1x128xf32>
    %24 = arith.mulf %9, %23 : vector<1x128xf32>
    %c7 = arith.constant 7 : index
    %25 = memref.load %arg1[%c7] : memref<13xf32, #tpu.memory_space<smem>>
    %26 = vector.broadcast %25 : f32 to vector<1x128xf32>
    %27 = arith.addf %24, %26 : vector<1x128xf32>
    %cst_4 = arith.constant 0.000000e+00 : f32
    %28 = vector.broadcast %cst_4 : f32 to vector<1x128xf32>
    %29 = arith.maximumf %27, %28 : vector<1x128xf32>
    %30 = arith.addf %21, %29 : vector<1x128xf32>
    %c5 = arith.constant 5 : index
    %31 = memref.load %arg1[%c5] : memref<13xf32, #tpu.memory_space<smem>>
    %32 = vector.broadcast %31 : f32 to vector<1x128xf32>
    %33 = arith.mulf %9, %32 : vector<1x128xf32>
    %c8 = arith.constant 8 : index
    %34 = memref.load %arg1[%c8] : memref<13xf32, #tpu.memory_space<smem>>
    %35 = vector.broadcast %34 : f32 to vector<1x128xf32>
    %36 = arith.addf %33, %35 : vector<1x128xf32>
    %cst_5 = arith.constant 0.000000e+00 : f32
    %37 = vector.broadcast %cst_5 : f32 to vector<1x128xf32>
    %38 = arith.maximumf %36, %37 : vector<1x128xf32>
    %39 = arith.addf %30, %38 : vector<1x128xf32>
    %c9 = arith.constant 9 : index
    %40 = memref.load %arg1[%c9] : memref<13xf32, #tpu.memory_space<smem>>
    %41 = vector.broadcast %40 : f32 to vector<1x128xf32>
    %42 = arith.mulf %9, %41 : vector<1x128xf32>
    %c11 = arith.constant 11 : index
    %43 = memref.load %arg1[%c11] : memref<13xf32, #tpu.memory_space<smem>>
    %44 = vector.broadcast %43 : f32 to vector<1x128xf32>
    %45 = arith.addf %42, %44 : vector<1x128xf32>
    %cst_6 = arith.constant 0.000000e+00 : f32
    %46 = vector.broadcast %cst_6 : f32 to vector<1x128xf32>
    %47 = arith.minimumf %45, %46 : vector<1x128xf32>
    %48 = arith.addf %39, %47 : vector<1x128xf32>
    %c10 = arith.constant 10 : index
    %49 = memref.load %arg1[%c10] : memref<13xf32, #tpu.memory_space<smem>>
    %50 = vector.broadcast %49 : f32 to vector<1x128xf32>
    %51 = arith.mulf %9, %50 : vector<1x128xf32>
    %c12 = arith.constant 12 : index
    %52 = memref.load %arg1[%c12] : memref<13xf32, #tpu.memory_space<smem>>
    %53 = vector.broadcast %52 : f32 to vector<1x128xf32>
    %54 = arith.addf %51, %53 : vector<1x128xf32>
    %cst_7 = arith.constant 0.000000e+00 : f32
    %55 = vector.broadcast %cst_7 : f32 to vector<1x128xf32>
    %56 = arith.minimumf %54, %55 : vector<1x128xf32>
    %57 = arith.addf %48, %56 : vector<1x128xf32>
    %c0_8 = arith.constant 0 : index
    %c0_9 = arith.constant 0 : index
    %58 = vector.load %arg3[%c0_8, %c0_9] : memref<1x128xf32, #tpu.memory_space<vmem>>, vector<1x128xf32>
    tpu.vector_store %arg3[%c0_8, %c0_9], %57 {strides = array<i32>} : memref<1x128xf32, #tpu.memory_space<vmem>>, vector<1x128xf32>,
    return
  }
  func.func @transform_0(%arg0: i32) -> i32 {
    %c0_i32 = arith.constant 0 : i32
    %c0_i32_0 = arith.constant 0 : i32
    return %c0_i32 : i32
  }
  func.func @transform_1(%arg0: i32) -> (i32, i32) {
    %c0_i32 = arith.constant 0 : i32
    %c0_i32_0 = arith.constant 0 : i32
    return %arg0, %c0_i32 : i32, i32
  }
  func.func @transform_2(%arg0: i32) -> (i32, i32) {
    %c0_i32 = arith.constant 0 : i32
    %c0_i32_0 = arith.constant 0 : i32
    return %arg0, %c0_i32 : i32, i32
  }
}

</mosaic_0001>

<bundles_post_ra>
// kernel: tpu_custom_call.1
= control target key start
LH: loop header
LB: loop body
LE: loop exit
PB: predicated region body
PF: predicated region fallthrough
CT: control target
= control target key end

     0   :  { %7 = vsyncpa [#allocation4], 0  ;;  %s165_s0 = inlined_call_operand.hbm [shape: f32[13], index: 0, kind: input, shape index: {}]   ;;  %s166_s1 = inlined_call_operand.vmem [shape: f32[1,128], index: 1, kind: input, shape index: {}]   ;;  %s167_s2 = inlined_call_operand.hbm [shape: f32[1,128], index: 2, kind: output, shape index: {}]  }
   0x1   :  { %8 = vsyncpa [#allocation3], 0  ;;  %s136_s9 = smov [#allocation2]  }
   0x2   :  { %16 = dma.hbm_to_smem %s165_s0, 16, %s136_s9, [#allocation4]  }
   0x3   :  { %132 = dma.done.wait [#allocation4], 16  }
   0x4   :  { %133 = vsyncadd [#allocation4], 4294967280 }
   0x5   :  { %22 = sfence }
   0x6   :  { %s23_s12 = sld [smem:[#allocation2]]  ;;  %v26_v0 = vld [vmem:[%s166_s1] sm:$0x1]  ;;  %s137_s1 = smov [#allocation5]  }
   0x7   :  { %s90_s13 = sld [smem:[#allocation2 + $0x1]]  ;;  %s81_s26 = sshll.u32 %s137_s1, 4  ;;  %s82_s26 = int_to_ptr.vmem [resolvable:$true] %s81_s26 }
   0x8   :  { %s156_s14 = sld [smem:[#allocation2 + $0x2]]  ;;  %s112_s27 = scalar_lea.vmem %s82_s26, 16 }
   0x9   :  { %s92_s15 = sld [smem:[#allocation2 + $0x3]]  ;;  %p113_p0 = scmp.ne.s32.totalorder %s82_s26, %s112_s27 }
   0xa   :  { %s93_s18 = sld [smem:[#allocation2 + $0x6]]  ;;  %s116_s28 = scalar_lea.vmem %s82_s26, 32 }
   0xb   :  { %s94_s19 = sld [smem:[#allocation2 + $0x4]]  ;;  %p117_p1 = scmp.lt.s32.totalorder %s82_s26, %s82_s26 }
   0xc   :  { %v27_v1 = vstv %s23_s12  ;;  %s95_s20 = sld [smem:[#allocation2 + $0x7]]  ;;  %p118_p2 = scmp.lt.s32.totalorder %s116_s28, %s112_s27 }
   0xd   :  { %v28_v2 = vmul.f32 %v27_v1, %v26_v0  ;;  %v29_v3 = vstv %s90_s13  ;;  %s96_s21 = sld [smem:[#allocation2 + $0x5]] }
   0xe   :  { %s97_s0 = sld [smem:[#allocation2 + $0x8]]  ;;  %v32_v18 = vstv %s156_s14  ;;  %p119_p3 = por %p118_p2, %p117_p1 }
   0xf   :  { %v30_v4 = vadd.f32 %v29_v3, %v28_v2  ;;  %s98_s22 = sld [smem:[#allocation2 + $0x9]]  ;;  %v35_v5 = vstv %s92_s15 }
  0x10   :  { %s99_s23 = sld [smem:[#allocation2 + $0xb]]  ;;  %v38_v8 = vstv %s93_s18  ;;  %p120_p4 = pnand %p119_p3, %p113_p0 }
  0x11   :  { %v31_v6 = vmax.f32 %v30_v4, 0.0  ;;  %v43_v7 = vstv %s94_s19  ;;  %s100_s24 = sld [smem:[#allocation2 + $0xa]] }
  0x12   :  { %v46_v9 = vstv %s95_s20  ;;  %s101_s25 = sld [smem:[#allocation2 + $0xc]] }
  0x13   :  { %v36_v10 = vmul.f32 %v35_v5, %v31_v6  ;;  %v44_v11 = vmul.f32 %v43_v7, %v31_v6  ;;  %v51_v12 = vstv %s96_s21 }
  0x14   :  { %v52_v13 = vmul.f32 %v51_v12, %v31_v6  ;;  %v54_v14 = vstv %s97_s0 }
  0x15   :  { %v39_v15 = vadd.f32 %v38_v8, %v36_v10  ;;  %v47_v16 = vadd.f32 %v46_v9, %v44_v11  ;;  %v59_v17 = vstv %s98_s22 }
  0x16   :  { %v55_v19 = vadd.f32 %v54_v14, %v52_v13  ;;  %v60_v20 = vmul.f32 %v59_v17, %v31_v6  ;;  %v62_v21 = vstv %s99_s23 }
  0x17   :  { %v40_v22 = vmax.f32 %v39_v15, 0.0  ;;  %v48_v23 = vmax.f32 %v47_v16, 0.0  ;;  %v67_v24 = vstv %s100_s24 }
  0x18   :  { %v63_v25 = vadd.f32 %v62_v21, %v60_v20  ;;  %v68_v26 = vmul.f32 %v67_v24, %v31_v6  ;;  %v70_v27 = vstv %s101_s25  ;;  %v56_v29 = vmax.f32 %v55_v19, 0.0 }
  0x19   :  { %v41_v28 = vadd.f32 %v40_v22, %v32_v18 }
  0x1a   :  { %v71_v30 = vadd.f32 %v70_v27, %v68_v26  ;;  %v64_v32 = vmin.f32 %v63_v25, 0.0 }
  0x1b   :  { %v49_v31 = vadd.f32 %v48_v23, %v41_v28 }
  0x1c   :  { %v72_v34 = vmin.f32 %v71_v30, 0.0 }
  0x1d   :  { %v57_v33 = vadd.f32 %v56_v29, %v49_v31 }
  0x1f   :  { %v65_v35 = vadd.f32 %v64_v32, %v57_v33 }
  0x21   :  { %v73_v36 = vadd.f32 %v72_v34, %v65_v35 }
  0x23   :  { %74 = vst [vmem:[#allocation5] sm:$0x1] %v73_v36 }
  0x24   :  { %123 = shalt.err (!%p120_p4)
}
  0x25   :  { %84 = dma.vmem_to_hbm [thread:$0]  %s82_s26, 16, %s167_s2, [#allocation3]  }
  0x26   :  { %134 = dma.done.wait [#allocation3], 16  }
  0x27   :  { %135 = vsyncadd [#allocation3], 4294967280 }
  0x28   :  { %88 = vsyncpa [#allocation3], 1 }
  0x29   :  { %89 = vsyncpa [#allocation4], 1 }

</bundles_post_ra>
